<compile_context>
chip_gen: v7x
topology: tpu7x:2x2x1
jax: 0.10.0
libtpu: 0.0.40
codegen_flags: <defaults>
</compile_context>

<pallas_src>
import jax
import jax.numpy as jnp
from jax import lax
from jax.experimental import pallas as pl
from jax.experimental.pallas import tpu as pltpu


def _round_up(n, m):
    return ((n + m - 1) // m) * m


def _pick_time_chunk(T, max_tc):
    """Multiple-of-8 time chunk <= max_tc minimizing time padding (ties -> larger)."""
    best_tc, best_pad = 8, (-T) % 8
    for tc in range(16, max_tc + 1, 8):
        pad = (-T) % tc
        if pad <= best_pad:
            best_tc, best_pad = tc, pad
    return best_tc


def _vmem_block_bytes(bt, tc, Ip, Hp):
    """Rough VMEM working set: double-buffered pipeline blocks + scratch."""
    x_blk = 2 * tc * bt * Ip * 2        # bf16 x chunk
    wih_blk = 2 * Ip * Hp * 2           # resident weights (still 2 buffers)
    whh_blk = 2 * Hp * Hp * 2
    hx_blk = 2 * bt * Hp * 4
    out_blk = 2 * tc * bt * Hp * 4      # f32 stacked-output chunk
    xw_scr = tc * bt * Hp * 4           # f32 projection scratch
    h_scr = bt * Hp * 4                 # f32 carry scratch
    return x_blk + wih_blk + whh_blk + hx_blk + out_blk + xw_scr + h_scr


def _rnn_kernel(x_ref, wih_ref, whh_ref, hx0_ref, out_ref, xw_scr, h_scr):
    """One (batch_tile, time_chunk) grid step.

    x_ref   : (tc, bt, Ip)  bf16   time-major input chunk (+ ones column)
    wih_ref : (Ip, Hp)      bf16   input weights with fused (b_ih + b_hh) row
    whh_ref : (Hp, Hp)      bf16   recurrent weights (resident)
    hx0_ref : (bt, Hp)      f32    initial hidden state for this batch tile
    out_ref : (tc, bt, Hp)  f32    stacked hidden states (time-major)
    xw_scr  : (tc, bt, Hp)  f32    per-chunk input projection
    h_scr   : (bt, Hp)      f32    recurrent carry across time chunks

    NOTE: correctness relies on the time grid axis being innermost and
    "arbitrary"; the carry in h_scr is seeded at t == 0 of each batch tile
    and updated sequentially across that tile's time chunks.
    """
    t = pl.program_id(1)

    @pl.when(t == 0)
    def _():
        h_scr[...] = hx0_ref[...]

    tc, bt, _ = x_ref.shape

    w_ih = wih_ref[...]           # bf16, resident
    w_hh = whh_ref[...]           # bf16, resident

    # ---- Chunk-start input projection (off the serial recurrence chain). ----
    # pre-activation contribution of x plus both biases (ones-column fold),
    # bf16 MXU operands, f32 accumulation, dense (bt, Hp) stores.
    def project(s, carry):
        xw_scr[s] = jnp.dot(x_ref[s], w_ih, preferred_element_type=jnp.float32)
        return carry

    lax.fori_loop(0, tc, project, 0, unroll=8)

    # ---- Serial recurrence: h_t = tanh(xw_t + h_{t-1} @ W_hh). ----
    def step(s, h):
        # h stays f32 between steps; bf16 only as the MXU operand.
        pre = xw_scr[s] + jnp.dot(h.astype(w_hh.dtype), w_hh,
                                  preferred_element_type=jnp.float32)
        h = jnp.tanh(pre)
        out_ref[s] = h
        return h

    h_fin = lax.fori_loop(0, tc, step, h_scr[...], unroll=8)
    h_scr[...] = h_fin


def rnn_forward(x, w_ih, b_ih, w_hh, b_hh, hx=None, *,
                max_batch_tile=256, max_time_chunk=32,
                vmem_budget_bytes=30 * 1024 * 1024):
    """Batch-major Elman RNN forward.  x: (B, T, I) -> ((B, T, H), (B, H))."""
    f32, bf16 = jnp.float32, jnp.bfloat16
    B, T, I = x.shape
    H = w_ih.shape[1]

    Hp = _round_up(H, 128)          # lane-dense hidden dim (unmasked stores)
    Ip = _round_up(I + 1, 128)      # input dim + ones column for fused biases

    # Fewer, fatter batch tiles -> fewer serial chains.  Keep bt a multiple of
    # 16 (bf16 sublane packing granule for the x blocks).
    bt = min(_round_up(B, 16), max_batch_tile)
    tc = _pick_time_chunk(T, max_time_chunk)
    # Shrink the time chunk first (extra grid steps are cheap), then the batch
    # tile, until the working set fits v7x's 64 MiB VMEM with headroom.
    while (_vmem_block_bytes(bt, tc, Ip, Hp) > vmem_budget_bytes
           and (tc > 8 or bt > 16)):
        if tc > 8:
            tc -= 8
        else:
            bt = max(16, _round_up(bt // 2, 16))
    Bp = _round_up(B, bt)
    Tp = _round_up(T, tc)

    # Time-major, padded, bf16 input; biases folded in via a ones column so
    # padded batch rows (zeros there) keep an exactly-zero hidden state.
    bias = (b_ih + b_hh).astype(f32)
    x_aug = jnp.concatenate([x.astype(f32), jnp.ones((B, T, 1), f32)], axis=-1)
    x_tm = jnp.transpose(x_aug, (1, 0, 2))                        # (T, B, I+1)
    x_tm = jnp.pad(
        x_tm, ((0, Tp - T), (0, Bp - B), (0, Ip - (I + 1)))).astype(bf16)

    w_ih_p = jnp.pad(
        jnp.concatenate([w_ih.astype(f32), bias[None, :]], axis=0),
        ((0, Ip - (I + 1)), (0, Hp - H))).astype(bf16)
    w_hh_p = jnp.pad(w_hh.astype(f32), ((0, Hp - H), (0, Hp - H))).astype(bf16)

    if hx is None:
        hx0 = jnp.zeros((Bp, Hp), f32)
    else:
        hx0 = jnp.pad(hx.astype(f32), ((0, Bp - B), (0, Hp - H)))

    nb, nt = Bp // bt, Tp // tc
    cost = pl.CostEstimate(
        flops=2 * Bp * Tp * Hp * (Ip + Hp),
        transcendentals=Bp * Tp * Hp,
        bytes_accessed=(x_tm.size * 2 + w_ih_p.size * 2 + w_hh_p.size * 2
                        + hx0.size * 4 + Tp * Bp * Hp * 4),
    )

    out_tm = pl.pallas_call(
        _rnn_kernel,
        out_shape=jax.ShapeDtypeStruct((Tp, Bp, Hp), f32),
        grid_spec=pltpu.PrefetchScalarGridSpec(
            num_scalar_prefetch=0,
            grid=(nb, nt),
            in_specs=[
                pl.BlockSpec((tc, bt, Ip), lambda b, t: (t, b, 0)),  # x chunk
                pl.BlockSpec((Ip, Hp), lambda b, t: (0, 0)),         # W_ih+bias
                pl.BlockSpec((Hp, Hp), lambda b, t: (0, 0)),         # W_hh
                pl.BlockSpec((bt, Hp), lambda b, t: (b, 0)),         # h_0
            ],
            out_specs=pl.BlockSpec((tc, bt, Hp), lambda b, t: (t, b, 0)),
            scratch_shapes=[
                pltpu.VMEM((tc, bt, Hp), f32),   # per-chunk input projection
                pltpu.VMEM((bt, Hp), f32),       # recurrent carry
            ],
        ),
        compiler_params=pltpu.CompilerParams(
            dimension_semantics=("parallel", "arbitrary"),
            vmem_limit_bytes=48 * 1024 * 1024,
        ),
        cost_estimate=cost,
    )(x_tm, w_ih_p, w_hh_p, hx0)

    out = jnp.transpose(out_tm[:T, :B, :H], (1, 0, 2)).astype(x.dtype)
    hx_fin = out_tm[T - 1, :B, :H].astype(x.dtype)
    return out, hx_fin


def rnn_reference(x, w_ih, b_ih, w_hh, b_hh, hx=None):
    """Pure-JAX f32 reference matching the PyTorch forward exactly."""
    B, T, _ = x.shape
    H = w_ih.shape[1]
    h = jnp.zeros((B, H), x.dtype) if hx is None else hx
    outs = []
    for t in range(T):
        h = jnp.tanh(x[:, t, :] @ w_ih + b_ih + h @ w_hh + b_hh)
        outs.append(h)
    return jnp.stack(outs, axis=1), h


def rnn_matched_ref(x, w_ih, b_ih, w_hh, b_hh):
    """Reference mirroring the kernel's bf16-operand / f32-accumulate math."""
    f32, bf16 = jnp.float32, jnp.bfloat16
    B, T, _ = x.shape
    H = w_ih.shape[1]
    bias = (b_ih + b_hh).astype(f32).astype(bf16).astype(f32)
    xw = jnp.dot(x.astype(bf16), w_ih.astype(f32).astype(bf16),
                 preferred_element_type=f32) + bias
    w_hh_b = w_hh.astype(f32).astype(bf16)
    h = jnp.zeros((B, H), f32)
    outs = []
    for t in range(T):
        pre = xw[:, t, :] + jnp.dot(h.astype(bf16), w_hh_b,
                                    preferred_element_type=f32)
        h = jnp.tanh(pre)
        outs.append(h)
    return jnp.stack(outs, axis=1), h


if __name__ == "__main__":
    B, T, INPUT_SIZE, HIDDEN_SIZE = 2, 8, 16, 32

    key = jax.random.PRNGKey(0)
    kx, k1, k2, k3, k4 = jax.random.split(key, 5)

    x = jax.random.normal(kx, (B, T, INPUT_SIZE), dtype=jnp.float32)
    # 1/sqrt(fan-in) weight scale -> contractive (non-chaotic) recurrence, so
    # the bf16 MXU operands stay comparable to the f32 reference over T steps.
    w_ih = jax.random.normal(k1, (INPUT_SIZE, HIDDEN_SIZE),
                             dtype=jnp.float32) / jnp.sqrt(float(INPUT_SIZE))
    b_ih = 0.1 * jax.random.normal(k2, (HIDDEN_SIZE,), dtype=jnp.float32)
    w_hh = jax.random.normal(k3, (HIDDEN_SIZE, HIDDEN_SIZE),
                             dtype=jnp.float32) / jnp.sqrt(float(HIDDEN_SIZE))
    b_hh = 0.1 * jax.random.normal(k4, (HIDDEN_SIZE,), dtype=jnp.float32)

    outputs, hx_fin = jax.jit(rnn_forward)(x, w_ih, b_ih, w_hh, b_hh)
    jax.block_until_ready((outputs, hx_fin))

    assert outputs.shape == (B, T, HIDDEN_SIZE)
    assert hx_fin.shape == (B, HIDDEN_SIZE)

    # Tight check vs. a reference that mirrors the kernel's mixed precision.
    m_out, m_hx = rnn_matched_ref(x, w_ih, b_ih, w_hh, b_hh)
    assert jnp.allclose(outputs, m_out, atol=2e-3, rtol=2e-3)
    assert jnp.allclose(hx_fin, m_hx, atol=2e-3, rtol=2e-3)

    # Looser semantic check vs. the pure-f32 PyTorch-equivalent forward
    # (difference is only the documented bf16 MXU operand rounding).
    r_out, r_hx = rnn_reference(x, w_ih, b_ih, w_hh, b_hh)
    assert jnp.allclose(outputs, r_out, atol=5e-2, rtol=5e-2)
    assert jnp.allclose(hx_fin, r_hx, atol=5e-2, rtol=5e-2)

    print("KERNEL_OK")
</pallas_src>

<mosaic_0001>
module attributes {stable_mosaic.version = 11 : i64} {
  func.func @_rnn_kernel(%arg0: i32, %arg1: i32, %arg2: memref<8x16x128xbf16, #tpu.memory_space<vmem>>, %arg3: memref<128x128xbf16, #tpu.memory_space<vmem>>, %arg4: memref<128x128xbf16, #tpu.memory_space<vmem>>, %arg5: memref<16x128xf32, #tpu.memory_space<vmem>>, %arg6: memref<8x16x128xf32, #tpu.memory_space<vmem>>, %arg7: memref<8x16x128xf32, #tpu.memory_space<vmem>>, %arg8: memref<16x128xf32, #tpu.memory_space<vmem>>) attributes {dimension_semantics = [#tpu.dimension_semantics<parallel>, #tpu.dimension_semantics<arbitrary>], iteration_bounds = array<i64: 1, 1>, scalar_prefetch = 0 : i64, scratch_operands = 2 : i64, tpu.core_type = #tpu.core_type<tc>, window_params = [{transform_indices = @transform_0, window_bounds = array<i64: 8, 16, 128>}, {pipeline_mode = #tpu.pipeline_mode<synchronous>, transform_indices = @transform_1, window_bounds = array<i64: 128, 128>}, {pipeline_mode = #tpu.pipeline_mode<synchronous>, transform_indices = @transform_2, window_bounds = array<i64: 128, 128>}, {transform_indices = @transform_3, window_bounds = array<i64: 16, 128>}, {transform_indices = @transform_4, window_bounds = array<i64: 8, 16, 128>}]} {
    %c0_i32 = arith.constant 0 : i32
    %0 = arith.cmpi eq, %arg1, %c0_i32 : i32
    %1 = arith.extui %0 : i1 to i32
    %c0_i32_0 = arith.constant 0 : i32
    %2 = arith.cmpi ne, %1, %c0_i32_0 : i32
    scf.if %2 {
      %c0_97 = arith.constant 0 : index
      %c0_98 = arith.constant 0 : index
      %159 = vector.load %arg5[%c0_97, %c0_98] : memref<16x128xf32, #tpu.memory_space<vmem>>, vector<16x128xf32>
      %c0_99 = arith.constant 0 : index
      %c0_100 = arith.constant 0 : index
      %160 = vector.load %arg8[%c0_99, %c0_100] : memref<16x128xf32, #tpu.memory_space<vmem>>, vector<16x128xf32>
      tpu.vector_store %arg8[%c0_99, %c0_100], %159 {strides = array<i32>} : memref<16x128xf32, #tpu.memory_space<vmem>>, vector<16x128xf32>,
    } else {
    }
    %c0 = arith.constant 0 : index
    %c0_1 = arith.constant 0 : index
    %3 = vector.load %arg3[%c0, %c0_1] : memref<128x128xbf16, #tpu.memory_space<vmem>>, vector<128x128xbf16>
    %c0_2 = arith.constant 0 : index
    %c0_3 = arith.constant 0 : index
    %4 = vector.load %arg4[%c0_2, %c0_3] : memref<128x128xbf16, #tpu.memory_space<vmem>>, vector<128x128xbf16>
    %c0_i32_4 = arith.constant 0 : i32
    %5 = arith.index_cast %c0_i32_4 : i32 to index
    %c0_5 = arith.constant 0 : index
    %c0_6 = arith.constant 0 : index
    %6 = vector.load %arg2[%5, %c0_5, %c0_6] : memref<8x16x128xbf16, #tpu.memory_space<vmem>>, vector<1x16x128xbf16>
    %7 = vector.shape_cast %6 : vector<1x16x128xbf16> to vector<16x128xbf16>
    %cst = arith.constant dense<0.000000e+00> : vector<16x128xf32>
    %8 = tpu.matmul %7, %3, %cst {dimension_numbers = #tpu.dot_dimension_numbers<[1], [0], [0], [1], [0, 0, 1, 1], [], []>} : vector<16x128xbf16>, vector<128x128xbf16>, vector<16x128xf32> -> vector<16x128xf32>
    %9 = arith.index_cast %c0_i32_4 : i32 to index
    %c0_7 = arith.constant 0 : index
    %c0_8 = arith.constant 0 : index
    %10 = vector.load %arg7[%9, %c0_7, %c0_8] : memref<8x16x128xf32, #tpu.memory_space<vmem>>, vector<1x16x128xf32>
    %11 = vector.shape_cast %10 : vector<1x16x128xf32> to vector<16x128xf32>
    %12 = vector.shape_cast %8 : vector<16x128xf32> to vector<1x16x128xf32>
    tpu.vector_store %arg7[%9, %c0_7, %c0_8], %12 {strides = array<i32>} : memref<8x16x128xf32, #tpu.memory_space<vmem>>, vector<1x16x128xf32>,
    %c1_i32 = arith.constant 1 : i32
    %13 = arith.index_cast %c1_i32 : i32 to index
    %c0_9 = arith.constant 0 : index
    %c0_10 = arith.constant 0 : index
    %14 = vector.load %arg2[%13, %c0_9, %c0_10] : memref<8x16x128xbf16, #tpu.memory_space<vmem>>, vector<1x16x128xbf16>
    %15 = vector.shape_cast %14 : vector<1x16x128xbf16> to vector<16x128xbf16>
    %cst_11 = arith.constant dense<0.000000e+00> : vector<16x128xf32>
    %16 = tpu.matmul %15, %3, %cst_11 {dimension_numbers = #tpu.dot_dimension_numbers<[1], [0], [0], [1], [0, 0, 1, 1], [], []>} : vector<16x128xbf16>, vector<128x128xbf16>, vector<16x128xf32> -> vector<16x128xf32>
    %17 = arith.index_cast %c1_i32 : i32 to index
    %c0_12 = arith.constant 0 : index
    %c0_13 = arith.constant 0 : index
    %18 = vector.load %arg7[%17, %c0_12, %c0_13] : memref<8x16x128xf32, #tpu.memory_space<vmem>>, vector<1x16x128xf32>
    %19 = vector.shape_cast %18 : vector<1x16x128xf32> to vector<16x128xf32>
    %20 = vector.shape_cast %16 : vector<16x128xf32> to vector<1x16x128xf32>
    tpu.vector_store %arg7[%17, %c0_12, %c0_13], %20 {strides = array<i32>} : memref<8x16x128xf32, #tpu.memory_space<vmem>>, vector<1x16x128xf32>,
    %c2_i32 = arith.constant 2 : i32
    %21 = arith.index_cast %c2_i32 : i32 to index
    %c0_14 = arith.constant 0 : index
    %c0_15 = arith.constant 0 : index
    %22 = vector.load %arg2[%21, %c0_14, %c0_15] : memref<8x16x128xbf16, #tpu.memory_space<vmem>>, vector<1x16x128xbf16>
    %23 = vector.shape_cast %22 : vector<1x16x128xbf16> to vector<16x128xbf16>
    %cst_16 = arith.constant dense<0.000000e+00> : vector<16x128xf32>
    %24 = tpu.matmul %23, %3, %cst_16 {dimension_numbers = #tpu.dot_dimension_numbers<[1], [0], [0], [1], [0, 0, 1, 1], [], []>} : vector<16x128xbf16>, vector<128x128xbf16>, vector<16x128xf32> -> vector<16x128xf32>
    %25 = arith.index_cast %c2_i32 : i32 to index
    %c0_17 = arith.constant 0 : index
    %c0_18 = arith.constant 0 : index
    %26 = vector.load %arg7[%25, %c0_17, %c0_18] : memref<8x16x128xf32, #tpu.memory_space<vmem>>, vector<1x16x128xf32>
    %27 = vector.shape_cast %26 : vector<1x16x128xf32> to vector<16x128xf32>
    %28 = vector.shape_cast %24 : vector<16x128xf32> to vector<1x16x128xf32>
    tpu.vector_store %arg7[%25, %c0_17, %c0_18], %28 {strides = array<i32>} : memref<8x16x128xf32, #tpu.memory_space<vmem>>, vector<1x16x128xf32>,
    %c3_i32 = arith.constant 3 : i32
    %29 = arith.index_cast %c3_i32 : i32 to index
    %c0_19 = arith.constant 0 : index
    %c0_20 = arith.constant 0 : index
    %30 = vector.load %arg2[%29, %c0_19, %c0_20] : memref<8x16x128xbf16, #tpu.memory_space<vmem>>, vector<1x16x128xbf16>
    %31 = vector.shape_cast %30 : vector<1x16x128xbf16> to vector<16x128xbf16>
    %cst_21 = arith.constant dense<0.000000e+00> : vector<16x128xf32>
    %32 = tpu.matmul %31, %3, %cst_21 {dimension_numbers = #tpu.dot_dimension_numbers<[1], [0], [0], [1], [0, 0, 1, 1], [], []>} : vector<16x128xbf16>, vector<128x128xbf16>, vector<16x128xf32> -> vector<16x128xf32>
    %33 = arith.index_cast %c3_i32 : i32 to index
    %c0_22 = arith.constant 0 : index
    %c0_23 = arith.constant 0 : index
    %34 = vector.load %arg7[%33, %c0_22, %c0_23] : memref<8x16x128xf32, #tpu.memory_space<vmem>>, vector<1x16x128xf32>
    %35 = vector.shape_cast %34 : vector<1x16x128xf32> to vector<16x128xf32>
    %36 = vector.shape_cast %32 : vector<16x128xf32> to vector<1x16x128xf32>
    tpu.vector_store %arg7[%33, %c0_22, %c0_23], %36 {strides = array<i32>} : memref<8x16x128xf32, #tpu.memory_space<vmem>>, vector<1x16x128xf32>,
    %c4_i32 = arith.constant 4 : i32
    %37 = arith.index_cast %c4_i32 : i32 to index
    %c0_24 = arith.constant 0 : index
    %c0_25 = arith.constant 0 : index
    %38 = vector.load %arg2[%37, %c0_24, %c0_25] : memref<8x16x128xbf16, #tpu.memory_space<vmem>>, vector<1x16x128xbf16>
    %39 = vector.shape_cast %38 : vector<1x16x128xbf16> to vector<16x128xbf16>
    %cst_26 = arith.constant dense<0.000000e+00> : vector<16x128xf32>
    %40 = tpu.matmul %39, %3, %cst_26 {dimension_numbers = #tpu.dot_dimension_numbers<[1], [0], [0], [1], [0, 0, 1, 1], [], []>} : vector<16x128xbf16>, vector<128x128xbf16>, vector<16x128xf32> -> vector<16x128xf32>
    %41 = arith.index_cast %c4_i32 : i32 to index
    %c0_27 = arith.constant 0 : index
    %c0_28 = arith.constant 0 : index
    %42 = vector.load %arg7[%41, %c0_27, %c0_28] : memref<8x16x128xf32, #tpu.memory_space<vmem>>, vector<1x16x128xf32>
    %43 = vector.shape_cast %42 : vector<1x16x128xf32> to vector<16x128xf32>
    %44 = vector.shape_cast %40 : vector<16x128xf32> to vector<1x16x128xf32>
    tpu.vector_store %arg7[%41, %c0_27, %c0_28], %44 {strides = array<i32>} : memref<8x16x128xf32, #tpu.memory_space<vmem>>, vector<1x16x128xf32>,
    %c5_i32 = arith.constant 5 : i32
    %45 = arith.index_cast %c5_i32 : i32 to index
    %c0_29 = arith.constant 0 : index
    %c0_30 = arith.constant 0 : index
    %46 = vector.load %arg2[%45, %c0_29, %c0_30] : memref<8x16x128xbf16, #tpu.memory_space<vmem>>, vector<1x16x128xbf16>
    %47 = vector.shape_cast %46 : vector<1x16x128xbf16> to vector<16x128xbf16>
    %cst_31 = arith.constant dense<0.000000e+00> : vector<16x128xf32>
    %48 = tpu.matmul %47, %3, %cst_31 {dimension_numbers = #tpu.dot_dimension_numbers<[1], [0], [0], [1], [0, 0, 1, 1], [], []>} : vector<16x128xbf16>, vector<128x128xbf16>, vector<16x128xf32> -> vector<16x128xf32>
    %49 = arith.index_cast %c5_i32 : i32 to index
    %c0_32 = arith.constant 0 : index
    %c0_33 = arith.constant 0 : index
    %50 = vector.load %arg7[%49, %c0_32, %c0_33] : memref<8x16x128xf32, #tpu.memory_space<vmem>>, vector<1x16x128xf32>
    %51 = vector.shape_cast %50 : vector<1x16x128xf32> to vector<16x128xf32>
    %52 = vector.shape_cast %48 : vector<16x128xf32> to vector<1x16x128xf32>
    tpu.vector_store %arg7[%49, %c0_32, %c0_33], %52 {strides = array<i32>} : memref<8x16x128xf32, #tpu.memory_space<vmem>>, vector<1x16x128xf32>,
    %c6_i32 = arith.constant 6 : i32
    %53 = arith.index_cast %c6_i32 : i32 to index
    %c0_34 = arith.constant 0 : index
    %c0_35 = arith.constant 0 : index
    %54 = vector.load %arg2[%53, %c0_34, %c0_35] : memref<8x16x128xbf16, #tpu.memory_space<vmem>>, vector<1x16x128xbf16>
    %55 = vector.shape_cast %54 : vector<1x16x128xbf16> to vector<16x128xbf16>
    %cst_36 = arith.constant dense<0.000000e+00> : vector<16x128xf32>
    %56 = tpu.matmul %55, %3, %cst_36 {dimension_numbers = #tpu.dot_dimension_numbers<[1], [0], [0], [1], [0, 0, 1, 1], [], []>} : vector<16x128xbf16>, vector<128x128xbf16>, vector<16x128xf32> -> vector<16x128xf32>
    %57 = arith.index_cast %c6_i32 : i32 to index
    %c0_37 = arith.constant 0 : index
    %c0_38 = arith.constant 0 : index
    %58 = vector.load %arg7[%57, %c0_37, %c0_38] : memref<8x16x128xf32, #tpu.memory_space<vmem>>, vector<1x16x128xf32>
    %59 = vector.shape_cast %58 : vector<1x16x128xf32> to vector<16x128xf32>
    %60 = vector.shape_cast %56 : vector<16x128xf32> to vector<1x16x128xf32>
    tpu.vector_store %arg7[%57, %c0_37, %c0_38], %60 {strides = array<i32>} : memref<8x16x128xf32, #tpu.memory_space<vmem>>, vector<1x16x128xf32>,
    %c7_i32 = arith.constant 7 : i32
    %61 = arith.index_cast %c7_i32 : i32 to index
    %c0_39 = arith.constant 0 : index
    %c0_40 = arith.constant 0 : index
    %62 = vector.load %arg2[%61, %c0_39, %c0_40] : memref<8x16x128xbf16, #tpu.memory_space<vmem>>, vector<1x16x128xbf16>
    %63 = vector.shape_cast %62 : vector<1x16x128xbf16> to vector<16x128xbf16>
    %cst_41 = arith.constant dense<0.000000e+00> : vector<16x128xf32>
    %64 = tpu.matmul %63, %3, %cst_41 {dimension_numbers = #tpu.dot_dimension_numbers<[1], [0], [0], [1], [0, 0, 1, 1], [], []>} : vector<16x128xbf16>, vector<128x128xbf16>, vector<16x128xf32> -> vector<16x128xf32>
    %65 = arith.index_cast %c7_i32 : i32 to index
    %c0_42 = arith.constant 0 : index
    %c0_43 = arith.constant 0 : index
    %66 = vector.load %arg7[%65, %c0_42, %c0_43] : memref<8x16x128xf32, #tpu.memory_space<vmem>>, vector<1x16x128xf32>
    %67 = vector.shape_cast %66 : vector<1x16x128xf32> to vector<16x128xf32>
    %68 = vector.shape_cast %64 : vector<16x128xf32> to vector<1x16x128xf32>
    tpu.vector_store %arg7[%65, %c0_42, %c0_43], %68 {strides = array<i32>} : memref<8x16x128xf32, #tpu.memory_space<vmem>>, vector<1x16x128xf32>,
    %c8_i32 = arith.constant 8 : i32
    %c0_44 = arith.constant 0 : index
    %c0_45 = arith.constant 0 : index
    %69 = vector.load %arg8[%c0_44, %c0_45] : memref<16x128xf32, #tpu.memory_space<vmem>>, vector<16x128xf32>
    %c0_i32_46 = arith.constant 0 : i32
    %70 = arith.index_cast %c0_i32_46 : i32 to index
    %c0_47 = arith.constant 0 : index
    %c0_48 = arith.constant 0 : index
    %71 = vector.load %arg7[%70, %c0_47, %c0_48] : memref<8x16x128xf32, #tpu.memory_space<vmem>>, vector<1x16x128xf32>
    %72 = vector.shape_cast %71 : vector<1x16x128xf32> to vector<16x128xf32>
    %73 = arith.truncf %69 : vector<16x128xf32> to vector<16x128xbf16>
    %cst_49 = arith.constant dense<0.000000e+00> : vector<16x128xf32>
    %74 = tpu.matmul %73, %4, %cst_49 {dimension_numbers = #tpu.dot_dimension_numbers<[1], [0], [0], [1], [0, 0, 1, 1], [], []>} : vector<16x128xbf16>, vector<128x128xbf16>, vector<16x128xf32> -> vector<16x128xf32>
    %75 = arith.addf %72, %74 : vector<16x128xf32>
    %76 = math.tanh %75 : vector<16x128xf32>
    %77 = arith.index_cast %c0_i32_46 : i32 to index
    %c0_50 = arith.constant 0 : index
    %c0_51 = arith.constant 0 : index
    %78 = vector.load %arg6[%77, %c0_50, %c0_51] : memref<8x16x128xf32, #tpu.memory_space<vmem>>, vector<1x16x128xf32>
    %79 = vector.shape_cast %78 : vector<1x16x128xf32> to vector<16x128xf32>
    %80 = vector.shape_cast %76 : vector<16x128xf32> to vector<1x16x128xf32>
    tpu.vector_store %arg6[%77, %c0_50, %c0_51], %80 {strides = array<i32>} : memref<8x16x128xf32, #tpu.memory_space<vmem>>, vector<1x16x128xf32>,
    %c1_i32_52 = arith.constant 1 : i32
    %81 = arith.index_cast %c1_i32_52 : i32 to index
    %c0_53 = arith.constant 0 : index
    %c0_54 = arith.constant 0 : index
    %82 = vector.load %arg7[%81, %c0_53, %c0_54] : memref<8x16x128xf32, #tpu.memory_space<vmem>>, vector<1x16x128xf32>
    %83 = vector.shape_cast %82 : vector<1x16x128xf32> to vector<16x128xf32>
    %84 = arith.truncf %76 : vector<16x128xf32> to vector<16x128xbf16>
    %cst_55 = arith.constant dense<0.000000e+00> : vector<16x128xf32>
    %85 = tpu.matmul %84, %4, %cst_55 {dimension_numbers = #tpu.dot_dimension_numbers<[1], [0], [0], [1], [0, 0, 1, 1], [], []>} : vector<16x128xbf16>, vector<128x128xbf16>, vector<16x128xf32> -> vector<16x128xf32>
    %86 = arith.addf %83, %85 : vector<16x128xf32>
    %87 = math.tanh %86 : vector<16x128xf32>
    %88 = arith.index_cast %c1_i32_52 : i32 to index
    %c0_56 = arith.constant 0 : index
    %c0_57 = arith.constant 0 : index
    %89 = vector.load %arg6[%88, %c0_56, %c0_57] : memref<8x16x128xf32, #tpu.memory_space<vmem>>, vector<1x16x128xf32>
    %90 = vector.shape_cast %89 : vector<1x16x128xf32> to vector<16x128xf32>
    %91 = vector.shape_cast %87 : vector<16x128xf32> to vector<1x16x128xf32>
    tpu.vector_store %arg6[%88, %c0_56, %c0_57], %91 {strides = array<i32>} : memref<8x16x128xf32, #tpu.memory_space<vmem>>, vector<1x16x128xf32>,
    %c2_i32_58 = arith.constant 2 : i32
    %92 = arith.index_cast %c2_i32_58 : i32 to index
    %c0_59 = arith.constant 0 : index
    %c0_60 = arith.constant 0 : index
    %93 = vector.load %arg7[%92, %c0_59, %c0_60] : memref<8x16x128xf32, #tpu.memory_space<vmem>>, vector<1x16x128xf32>
    %94 = vector.shape_cast %93 : vector<1x16x128xf32> to vector<16x128xf32>
    %95 = arith.truncf %87 : vector<16x128xf32> to vector<16x128xbf16>
    %cst_61 = arith.constant dense<0.000000e+00> : vector<16x128xf32>
    %96 = tpu.matmul %95, %4, %cst_61 {dimension_numbers = #tpu.dot_dimension_numbers<[1], [0], [0], [1], [0, 0, 1, 1], [], []>} : vector<16x128xbf16>, vector<128x128xbf16>, vector<16x128xf32> -> vector<16x128xf32>
    %97 = arith.addf %94, %96 : vector<16x128xf32>
    %98 = math.tanh %97 : vector<16x128xf32>
    %99 = arith.index_cast %c2_i32_58 : i32 to index
    %c0_62 = arith.constant 0 : index
    %c0_63 = arith.constant 0 : index
    %100 = vector.load %arg6[%99, %c0_62, %c0_63] : memref<8x16x128xf32, #tpu.memory_space<vmem>>, vector<1x16x128xf32>
    %101 = vector.shape_cast %100 : vector<1x16x128xf32> to vector<16x128xf32>
    %102 = vector.shape_cast %98 : vector<16x128xf32> to vector<1x16x128xf32>
    tpu.vector_store %arg6[%99, %c0_62, %c0_63], %102 {strides = array<i32>} : memref<8x16x128xf32, #tpu.memory_space<vmem>>, vector<1x16x128xf32>,
    %c3_i32_64 = arith.constant 3 : i32
    %103 = arith.index_cast %c3_i32_64 : i32 to index
    %c0_65 = arith.constant 0 : index
    %c0_66 = arith.constant 0 : index
    %104 = vector.load %arg7[%103, %c0_65, %c0_66] : memref<8x16x128xf32, #tpu.memory_space<vmem>>, vector<1x16x128xf32>
    %105 = vector.shape_cast %104 : vector<1x16x128xf32> to vector<16x128xf32>
    %106 = arith.truncf %98 : vector<16x128xf32> to vector<16x128xbf16>
    %cst_67 = arith.constant dense<0.000000e+00> : vector<16x128xf32>
    %107 = tpu.matmul %106, %4, %cst_67 {dimension_numbers = #tpu.dot_dimension_numbers<[1], [0], [0], [1], [0, 0, 1, 1], [], []>} : vector<16x128xbf16>, vector<128x128xbf16>, vector<16x128xf32> -> vector<16x128xf32>
    %108 = arith.addf %105, %107 : vector<16x128xf32>
    %109 = math.tanh %108 : vector<16x128xf32>
    %110 = arith.index_cast %c3_i32_64 : i32 to index
    %c0_68 = arith.constant 0 : index
    %c0_69 = arith.constant 0 : index
    %111 = vector.load %arg6[%110, %c0_68, %c0_69] : memref<8x16x128xf32, #tpu.memory_space<vmem>>, vector<1x16x128xf32>
    %112 = vector.shape_cast %111 : vector<1x16x128xf32> to vector<16x128xf32>
    %113 = vector.shape_cast %109 : vector<16x128xf32> to vector<1x16x128xf32>
    tpu.vector_store %arg6[%110, %c0_68, %c0_69], %113 {strides = array<i32>} : memref<8x16x128xf32, #tpu.memory_space<vmem>>, vector<1x16x128xf32>,
    %c4_i32_70 = arith.constant 4 : i32
    %114 = arith.index_cast %c4_i32_70 : i32 to index
    %c0_71 = arith.constant 0 : index
    %c0_72 = arith.constant 0 : index
    %115 = vector.load %arg7[%114, %c0_71, %c0_72] : memref<8x16x128xf32, #tpu.memory_space<vmem>>, vector<1x16x128xf32>
    %116 = vector.shape_cast %115 : vector<1x16x128xf32> to vector<16x128xf32>
    %117 = arith.truncf %109 : vector<16x128xf32> to vector<16x128xbf16>
    %cst_73 = arith.constant dense<0.000000e+00> : vector<16x128xf32>
    %118 = tpu.matmul %117, %4, %cst_73 {dimension_numbers = #tpu.dot_dimension_numbers<[1], [0], [0], [1], [0, 0, 1, 1], [], []>} : vector<16x128xbf16>, vector<128x128xbf16>, vector<16x128xf32> -> vector<16x128xf32>
    %119 = arith.addf %116, %118 : vector<16x128xf32>
    %120 = math.tanh %119 : vector<16x128xf32>
    %121 = arith.index_cast %c4_i32_70 : i32 to index
    %c0_74 = arith.constant 0 : index
    %c0_75 = arith.constant 0 : index
    %122 = vector.load %arg6[%121, %c0_74, %c0_75] : memref<8x16x128xf32, #tpu.memory_space<vmem>>, vector<1x16x128xf32>
    %123 = vector.shape_cast %122 : vector<1x16x128xf32> to vector<16x128xf32>
    %124 = vector.shape_cast %120 : vector<16x128xf32> to vector<1x16x128xf32>
    tpu.vector_store %arg6[%121, %c0_74, %c0_75], %124 {strides = array<i32>} : memref<8x16x128xf32, #tpu.memory_space<vmem>>, vector<1x16x128xf32>,
    %c5_i32_76 = arith.constant 5 : i32
    %125 = arith.index_cast %c5_i32_76 : i32 to index
    %c0_77 = arith.constant 0 : index
    %c0_78 = arith.constant 0 : index
    %126 = vector.load %arg7[%125, %c0_77, %c0_78] : memref<8x16x128xf32, #tpu.memory_space<vmem>>, vector<1x16x128xf32>
    %127 = vector.shape_cast %126 : vector<1x16x128xf32> to vector<16x128xf32>
    %128 = arith.truncf %120 : vector<16x128xf32> to vector<16x128xbf16>
    %cst_79 = arith.constant dense<0.000000e+00> : vector<16x128xf32>
    %129 = tpu.matmul %128, %4, %cst_79 {dimension_numbers = #tpu.dot_dimension_numbers<[1], [0], [0], [1], [0, 0, 1, 1], [], []>} : vector<16x128xbf16>, vector<128x128xbf16>, vector<16x128xf32> -> vector<16x128xf32>
    %130 = arith.addf %127, %129 : vector<16x128xf32>
    %131 = math.tanh %130 : vector<16x128xf32>
    %132 = arith.index_cast %c5_i32_76 : i32 to index
    %c0_80 = arith.constant 0 : index
    %c0_81 = arith.constant 0 : index
    %133 = vector.load %arg6[%132, %c0_80, %c0_81] : memref<8x16x128xf32, #tpu.memory_space<vmem>>, vector<1x16x128xf32>
    %134 = vector.shape_cast %133 : vector<1x16x128xf32> to vector<16x128xf32>
    %135 = vector.shape_cast %131 : vector<16x128xf32> to vector<1x16x128xf32>
    tpu.vector_store %arg6[%132, %c0_80, %c0_81], %135 {strides = array<i32>} : memref<8x16x128xf32, #tpu.memory_space<vmem>>, vector<1x16x128xf32>,
    %c6_i32_82 = arith.constant 6 : i32
    %136 = arith.index_cast %c6_i32_82 : i32 to index
    %c0_83 = arith.constant 0 : index
    %c0_84 = arith.constant 0 : index
    %137 = vector.load %arg7[%136, %c0_83, %c0_84] : memref<8x16x128xf32, #tpu.memory_space<vmem>>, vector<1x16x128xf32>
    %138 = vector.shape_cast %137 : vector<1x16x128xf32> to vector<16x128xf32>
    %139 = arith.truncf %131 : vector<16x128xf32> to vector<16x128xbf16>
    %cst_85 = arith.constant dense<0.000000e+00> : vector<16x128xf32>
    %140 = tpu.matmul %139, %4, %cst_85 {dimension_numbers = #tpu.dot_dimension_numbers<[1], [0], [0], [1], [0, 0, 1, 1], [], []>} : vector<16x128xbf16>, vector<128x128xbf16>, vector<16x128xf32> -> vector<16x128xf32>
    %141 = arith.addf %138, %140 : vector<16x128xf32>
    %142 = math.tanh %141 : vector<16x128xf32>
    %143 = arith.index_cast %c6_i32_82 : i32 to index
    %c0_86 = arith.constant 0 : index
    %c0_87 = arith.constant 0 : index
    %144 = vector.load %arg6[%143, %c0_86, %c0_87] : memref<8x16x128xf32, #tpu.memory_space<vmem>>, vector<1x16x128xf32>
    %145 = vector.shape_cast %144 : vector<1x16x128xf32> to vector<16x128xf32>
    %146 = vector.shape_cast %142 : vector<16x128xf32> to vector<1x16x128xf32>
    tpu.vector_store %arg6[%143, %c0_86, %c0_87], %146 {strides = array<i32>} : memref<8x16x128xf32, #tpu.memory_space<vmem>>, vector<1x16x128xf32>,
    %c7_i32_88 = arith.constant 7 : i32
    %147 = arith.index_cast %c7_i32_88 : i32 to index
    %c0_89 = arith.constant 0 : index
    %c0_90 = arith.constant 0 : index
    %148 = vector.load %arg7[%147, %c0_89, %c0_90] : memref<8x16x128xf32, #tpu.memory_space<vmem>>, vector<1x16x128xf32>
    %149 = vector.shape_cast %148 : vector<1x16x128xf32> to vector<16x128xf32>
    %150 = arith.truncf %142 : vector<16x128xf32> to vector<16x128xbf16>
    %cst_91 = arith.constant dense<0.000000e+00> : vector<16x128xf32>
    %151 = tpu.matmul %150, %4, %cst_91 {dimension_numbers = #tpu.dot_dimension_numbers<[1], [0], [0], [1], [0, 0, 1, 1], [], []>} : vector<16x128xbf16>, vector<128x128xbf16>, vector<16x128xf32> -> vector<16x128xf32>
    %152 = arith.addf %149, %151 : vector<16x128xf32>
    %153 = math.tanh %152 : vector<16x128xf32>
    %154 = arith.index_cast %c7_i32_88 : i32 to index
    %c0_92 = arith.constant 0 : index
    %c0_93 = arith.constant 0 : index
    %155 = vector.load %arg6[%154, %c0_92, %c0_93] : memref<8x16x128xf32, #tpu.memory_space<vmem>>, vector<1x16x128xf32>
    %156 = vector.shape_cast %155 : vector<1x16x128xf32> to vector<16x128xf32>
    %157 = vector.shape_cast %153 : vector<16x128xf32> to vector<1x16x128xf32>
    tpu.vector_store %arg6[%154, %c0_92, %c0_93], %157 {strides = array<i32>} : memref<8x16x128xf32, #tpu.memory_space<vmem>>, vector<1x16x128xf32>,
    %c8_i32_94 = arith.constant 8 : i32
    %c0_95 = arith.constant 0 : index
    %c0_96 = arith.constant 0 : index
    %158 = vector.load %arg8[%c0_95, %c0_96] : memref<16x128xf32, #tpu.memory_space<vmem>>, vector<16x128xf32>
    tpu.vector_store %arg8[%c0_95, %c0_96], %153 {strides = array<i32>} : memref<16x128xf32, #tpu.memory_space<vmem>>, vector<16x128xf32>,
    return
  }
  func.func @transform_0(%arg0: i32, %arg1: i32) -> (i32, i32, i32) {
    %c0_i32 = arith.constant 0 : i32
    %c0_i32_0 = arith.constant 0 : i32
    return %arg1, %arg0, %c0_i32 : i32, i32, i32
  }
  func.func @transform_1(%arg0: i32, %arg1: i32) -> (i32, i32) {
    %c0_i32 = arith.constant 0 : i32
    %c0_i32_0 = arith.constant 0 : i32
    %c0_i32_1 = arith.constant 0 : i32
    return %c0_i32, %c0_i32_0 : i32, i32
  }
  func.func @transform_2(%arg0: i32, %arg1: i32) -> (i32, i32) {
    %c0_i32 = arith.constant 0 : i32
    %c0_i32_0 = arith.constant 0 : i32
    %c0_i32_1 = arith.constant 0 : i32
    return %c0_i32, %c0_i32_0 : i32, i32
  }
  func.func @transform_3(%arg0: i32, %arg1: i32) -> (i32, i32) {
    %c0_i32 = arith.constant 0 : i32
    %c0_i32_0 = arith.constant 0 : i32
    return %arg0, %c0_i32 : i32, i32
  }
  func.func @transform_4(%arg0: i32, %arg1: i32) -> (i32, i32, i32) {
    %c0_i32 = arith.constant 0 : i32
    %c0_i32_0 = arith.constant 0 : i32
    return %arg1, %arg0, %c0_i32 : i32, i32, i32
  }
}

</mosaic_0001>

<bundles_post_ra>
// kernel: rnn_forward.1
= control target key start
LH: loop header
LB: loop body
LE: loop exit
PB: predicated region body
PF: predicated region fallthrough
CT: control target
= control target key end

     0   :  { %v1597_v0 = vmov 0.0   ;;  %vm1598_vm0 = vmmov 0   ;;  %s2070_s1 = inlined_call_operand.vmem [shape: bf16[128,128], index: 1, kind: input, shape index: {}]   ;;  %s2071_s0 = inlined_call_operand.vmem [shape: bf16[8,16,128], index: 0, kind: input, shape index: {}]   ;;  %s2072_s2 = inlined_call_operand.vmem [shape: bf16[128,128], index: 2, kind: input, shape index: {}]   ;;  %s2073_s3 = inlined_call_operand.vmem [shape: f32[16,128], index: 3, kind: input, shape index: {}]   ;;  %s2074_s4 = inlined_call_operand.vmem [shape: f32[8,16,128], index: 4, kind: output, shape index: {}]  }
   0x1   :  { %1187 = vmatprep.subr.bf16.mxu0 %v1597_v0  ;;  %v1628_v1 = vld [vmem:[%s2070_s1] sm:$0xff]   ;;  %1203 = vmatprep.mubr.msk.bf16.mxu0 %vm1598_vm0, %v1597_v0  ;;  %v1639_v2 = vld [vmem:[%s2070_s1 + $0x8] sm:$0xff]   ;;  %v1648_v3 = vld [vmem:[%s2070_s1 + $0x10] sm:$0xff]  }
   0x2   :  { %1207 = vmatprep.subr.bf16.mxu1 %v1597_v0  ;;  %1223 = vmatprep.mubr.msk.bf16.mxu1 %vm1598_vm0, %v1597_v0  ;;  %v1657_v4 = vld [vmem:[%s2070_s1 + $0x18] sm:$0xff]   ;;  %v1666_v5 = vld [vmem:[%s2070_s1 + $0x20] sm:$0xff]   ;;  %v1674_v6 = vld [vmem:[%s2070_s1 + $0x28] sm:$0xff]  }
   0x3   :  { %1188 = vmatpush3.bf16.msra.mxu0 %v1628_v1  ;;  %1208 = vmatpush3.bf16.msra.mxu1 %v1628_v1  ;;  %v1684_v7 = vld [vmem:[%s2070_s1 + $0x30] sm:$0xff]   ;;  %v1693_v8 = vld [vmem:[%s2070_s1 + $0x38] sm:$0xff]   ;;  %v1549_v9 = vld [vmem:[%s2071_s0] sm:$0xff]  }
   0x4   :  { %1189 = vmatprep.subr.bf16.mxu0 %v1597_v0  ;;  %1209 = vmatprep.subr.bf16.mxu1 %v1597_v0  ;;  %v1561_v10 = vld [vmem:[%s2071_s0 + $0x8] sm:$0xff]   ;;  %v1550_v11 = vld [vmem:[%s2071_s0 + $0x10] sm:$0xff]   ;;  %v1562_v12 = vld [vmem:[%s2071_s0 + $0x18] sm:$0xff]  }
   0x5   :  { %v1551_v13 = vld [vmem:[%s2071_s0 + $0x20] sm:$0xff]   ;;  %v1563_v14 = vld [vmem:[%s2071_s0 + $0x28] sm:$0xff]   ;;  %v1552_v15 = vld [vmem:[%s2071_s0 + $0x30] sm:$0xff]  }
   0x6   :  { %v1831_v16 = vld [vmem:[%s2072_s2] sm:$0xff]   ;;  %v1564_v17 = vld [vmem:[%s2071_s0 + $0x38] sm:$0xff]   ;;  %v1843_v18 = vld [vmem:[%s2072_s2 + $0x8] sm:$0xff]  }
   0x7   :  { %1190 = vmatpush3.bf16.msra.mxu0 %v1639_v2  ;;  %1210 = vmatpush3.bf16.msra.mxu1 %v1639_v2  ;;  %v1856_v19 = vld [vmem:[%s2072_s2 + $0x10] sm:$0xff]   ;;  %v1865_v20 = vld [vmem:[%s2072_s2 + $0x18] sm:$0xff]   ;;  %v1874_v21 = vld [vmem:[%s2072_s2 + $0x20] sm:$0xff]  }
   0x8   :  { %1191 = vmatprep.subr.bf16.mxu0 %v1597_v0  ;;  %1211 = vmatprep.subr.bf16.mxu1 %v1597_v0  ;;  %v1883_v22 = vld [vmem:[%s2072_s2 + $0x28] sm:$0xff]   ;;  %v1892_v23 = vld [vmem:[%s2072_s2 + $0x30] sm:$0xff]   ;;  %v1901_v24 = vld [vmem:[%s2072_s2 + $0x38] sm:$0xff]  }
   0x9   :  { %v22_v25 = vld [vmem:[%s2073_s3] sm:$0xff]  ;;  %v23_v26 = vld [vmem:[%s2073_s3 + $0x8] sm:$0xff] }
   0xa   :  { %v532_v27 = vpack.c.bf16 %v23_v26, %v22_v25 }
   0xb   :  { %1192 = vmatpush3.bf16.msra.mxu0 %v1648_v3  ;;  %1212 = vmatpush3.bf16.msra.mxu1 %v1648_v3 }
   0xc   :  { %1193 = vmatprep.subr.bf16.mxu0 %v1597_v0  ;;  %1213 = vmatprep.subr.bf16.mxu1 %v1597_v0 }
   0xf   :  { %1194 = vmatpush3.bf16.msra.mxu0 %v1657_v4  ;;  %1214 = vmatpush3.bf16.msra.mxu1 %v1657_v4 }
  0x10   :  { %1195 = vmatprep.subr.bf16.mxu0 %v1597_v0  ;;  %1215 = vmatprep.subr.bf16.mxu1 %v1597_v0 }
  0x13   :  { %1196 = vmatpush3.bf16.msra.mxu0 %v1666_v5  ;;  %1216 = vmatpush3.bf16.msra.mxu1 %v1666_v5 }
  0x14   :  { %1197 = vmatprep.subr.bf16.mxu0 %v1597_v0  ;;  %1217 = vmatprep.subr.bf16.mxu1 %v1597_v0 }
  0x17   :  { %1198 = vmatpush3.bf16.msra.mxu0 %v1674_v6  ;;  %1218 = vmatpush3.bf16.msra.mxu1 %v1674_v6 }
  0x18   :  { %1199 = vmatprep.subr.bf16.mxu0 %v1597_v0  ;;  %1219 = vmatprep.subr.bf16.mxu1 %v1597_v0 }
  0x1b   :  { %1200 = vmatpush3.bf16.msra.mxu0 %v1684_v7  ;;  %1220 = vmatpush3.bf16.msra.mxu1 %v1684_v7 }
  0x1c   :  { %1201 = vmatprep.subr.bf16.mxu0 %v1597_v0  ;;  %1221 = vmatprep.subr.bf16.mxu1 %v1597_v0 }
  0x1f   :  { %1202 = vmatpush3.bf16.msra.mxu0 %v1693_v8  ;;  %1222 = vmatpush3.bf16.msra.mxu1 %v1693_v8 }
  0x20   :  { %1227 = vmatprep.subr.bf16.mxu0 %v1597_v0  ;;  %1247 = vmatprep.subr.bf16.mxu1 %v1597_v0 }
  0x22   :  { %1204 = vmatmul.mubr.bf16.vlgmr.msra.gmra.mrb[0].mxu0 %v1549_v9  ;;  %1224 = vmatmul.mubr.bf16.vlgmr.msra.gmra.mrb[0].mxu1 %v1561_v10 }
  0x23   :  { %1228 = vmatpush3.bf16.msra.mxu0 %v1628_v1  ;;  %1243 = vmatprep.mubr.msk.bf16.mxu0 %vm1598_vm0, %v1597_v0 }
  0x24   :  { %1229 = vmatprep.subr.bf16.mxu0 %v1597_v0  ;;  %1248 = vmatpush3.bf16.msra.mxu1 %v1628_v1 }
  0x25   :  { %1263 = vmatprep.mubr.msk.bf16.mxu1 %vm1598_vm0, %v1597_v0  ;;  %1249 = vmatprep.subr.bf16.mxu1 %v1597_v0 }
  0x27   :  { %1230 = vmatpush3.bf16.msra.mxu0 %v1639_v2 }
  0x28   :  { %1231 = vmatprep.subr.bf16.mxu0 %v1597_v0  ;;  %1250 = vmatpush3.bf16.msra.mxu1 %v1639_v2 }
  0x29   :  { %1251 = vmatprep.subr.bf16.mxu1 %v1597_v0 }
  0x2b   :  { %1232 = vmatpush3.bf16.msra.mxu0 %v1648_v3 }
  0x2c   :  { %1233 = vmatprep.subr.bf16.mxu0 %v1597_v0  ;;  %1252 = vmatpush3.bf16.msra.mxu1 %v1648_v3 }
  0x2d   :  { %1253 = vmatprep.subr.bf16.mxu1 %v1597_v0 }
  0x2f   :  { %1234 = vmatpush3.bf16.msra.mxu0 %v1657_v4 }
  0x30   :  { %1235 = vmatprep.subr.bf16.mxu0 %v1597_v0  ;;  %1254 = vmatpush3.bf16.msra.mxu1 %v1657_v4 }
  0x31   :  { %1255 = vmatprep.subr.bf16.mxu1 %v1597_v0 }
  0x33   :  { %1236 = vmatpush3.bf16.msra.mxu0 %v1666_v5 }
  0x34   :  { %1237 = vmatprep.subr.bf16.mxu0 %v1597_v0  ;;  %1256 = vmatpush3.bf16.msra.mxu1 %v1666_v5 }
  0x35   :  { %1257 = vmatprep.subr.bf16.mxu1 %v1597_v0 }
  0x37   :  { %1238 = vmatpush3.bf16.msra.mxu0 %v1674_v6 }
  0x38   :  { %1239 = vmatprep.subr.bf16.mxu0 %v1597_v0  ;;  %1258 = vmatpush3.bf16.msra.mxu1 %v1674_v6 }
  0x39   :  { %1259 = vmatprep.subr.bf16.mxu1 %v1597_v0 }
  0x3b   :  { %1240 = vmatpush3.bf16.msra.mxu0 %v1684_v7 }
  0x3c   :  { %1241 = vmatprep.subr.bf16.mxu0 %v1597_v0  ;;  %1260 = vmatpush3.bf16.msra.mxu1 %v1684_v7 }
  0x3d   :  { %1261 = vmatprep.subr.bf16.mxu1 %v1597_v0 }
  0x3f   :  { %1242 = vmatpush3.bf16.msra.mxu0 %v1693_v8 }
  0x40   :  { %1267 = vmatprep.subr.bf16.mxu0 %v1597_v0  ;;  %1262 = vmatpush3.bf16.msra.mxu1 %v1693_v8 }
  0x41   :  { %1287 = vmatprep.subr.bf16.mxu1 %v1597_v0 }
  0x42   :  { %1244 = vmatmul.mubr.bf16.vlgmr.msra.gmra.mrb[4].mxu0 %v1550_v11 }
  0x43   :  { %1268 = vmatpush3.bf16.msra.mxu0 %v1628_v1  ;;  %1283 = vmatprep.mubr.msk.bf16.mxu0 %vm1598_vm0, %v1597_v0 }
  0x44   :  { %1269 = vmatprep.subr.bf16.mxu0 %v1597_v0  ;;  %1264 = vmatmul.mubr.bf16.vlgmr.msra.gmra.mrb[4].mxu1 %v1562_v12 }
  0x45   :  { %1288 = vmatpush3.bf16.msra.mxu1 %v1628_v1  ;;  %1303 = vmatprep.mubr.msk.bf16.mxu1 %vm1598_vm0, %v1597_v0 }
  0x46   :  { %1289 = vmatprep.subr.bf16.mxu1 %v1597_v0 }
  0x47   :  { %1270 = vmatpush3.bf16.msra.mxu0 %v1639_v2 }
  0x48   :  { %1271 = vmatprep.subr.bf16.mxu0 %v1597_v0 }
  0x49   :  { %1290 = vmatpush3.bf16.msra.mxu1 %v1639_v2 }
  0x4a   :  { %1291 = vmatprep.subr.bf16.mxu1 %v1597_v0 }
  0x4b   :  { %1272 = vmatpush3.bf16.msra.mxu0 %v1648_v3 }
  0x4c   :  { %1273 = vmatprep.subr.bf16.mxu0 %v1597_v0 }
  0x4d   :  { %1292 = vmatpush3.bf16.msra.mxu1 %v1648_v3 }
  0x4e   :  { %1293 = vmatprep.subr.bf16.mxu1 %v1597_v0 }
  0x4f   :  { %1274 = vmatpush3.bf16.msra.mxu0 %v1657_v4 }
  0x50   :  { %1275 = vmatprep.subr.bf16.mxu0 %v1597_v0 }
  0x51   :  { %1294 = vmatpush3.bf16.msra.mxu1 %v1657_v4 }
  0x52   :  { %1295 = vmatprep.subr.bf16.mxu1 %v1597_v0 }
  0x53   :  { %1276 = vmatpush3.bf16.msra.mxu0 %v1666_v5 }
  0x54   :  { %1277 = vmatprep.subr.bf16.mxu0 %v1597_v0 }
  0x55   :  { %1296 = vmatpush3.bf16.msra.mxu1 %v1666_v5 }
  0x56   :  { %1297 = vmatprep.subr.bf16.mxu1 %v1597_v0 }
  0x57   :  { %1278 = vmatpush3.bf16.msra.mxu0 %v1674_v6 }
  0x58   :  { %1279 = vmatprep.subr.bf16.mxu0 %v1597_v0 }
  0x59   :  { %1298 = vmatpush3.bf16.msra.mxu1 %v1674_v6 }
  0x5a   :  { %1299 = vmatprep.subr.bf16.mxu1 %v1597_v0 }
  0x5b   :  { %1280 = vmatpush3.bf16.msra.mxu0 %v1684_v7 }
  0x5c   :  { %1281 = vmatprep.subr.bf16.mxu0 %v1597_v0 }
  0x5d   :  { %1300 = vmatpush3.bf16.msra.mxu1 %v1684_v7 }
  0x5e   :  { %1301 = vmatprep.subr.bf16.mxu1 %v1597_v0 }
  0x5f   :  { %1282 = vmatpush3.bf16.msra.mxu0 %v1693_v8 }
  0x60   :  { %1307 = vmatprep.subr.bf16.mxu0 %v1597_v0 }
  0x61   :  { %1302 = vmatpush3.bf16.msra.mxu1 %v1693_v8 }
  0x62   :  { %1284 = vmatmul.mubr.bf16.vlgmr.msra.gmra.mrb[8].mxu0 %v1551_v13  ;;  %1327 = vmatprep.subr.bf16.mxu1 %v1597_v0 }
  0x63   :  { %1308 = vmatpush3.bf16.msra.mxu0 %v1628_v1  ;;  %1323 = vmatprep.mubr.msk.bf16.mxu0 %vm1598_vm0, %v1597_v0 }
  0x64   :  { %1309 = vmatprep.subr.bf16.mxu0 %v1597_v0  ;;  %1304 = vmatmul.mubr.bf16.vlgmr.msra.gmra.mrb[8].mxu1 %v1563_v14 }
  0x65   :  { %1328 = vmatpush3.bf16.msra.mxu1 %v1628_v1  ;;  %1343 = vmatprep.mubr.msk.bf16.mxu1 %vm1598_vm0, %v1597_v0 }
  0x66   :  { %1329 = vmatprep.subr.bf16.mxu1 %v1597_v0 }
  0x67   :  { %1310 = vmatpush3.bf16.msra.mxu0 %v1639_v2 }
  0x68   :  { %1311 = vmatprep.subr.bf16.mxu0 %v1597_v0 }
  0x69   :  { %1330 = vmatpush3.bf16.msra.mxu1 %v1639_v2 }
  0x6a   :  { %1331 = vmatprep.subr.bf16.mxu1 %v1597_v0 }
  0x6b   :  { %1312 = vmatpush3.bf16.msra.mxu0 %v1648_v3 }
  0x6c   :  { %1313 = vmatprep.subr.bf16.mxu0 %v1597_v0 }
  0x6d   :  { %1332 = vmatpush3.bf16.msra.mxu1 %v1648_v3 }
  0x6e   :  { %1333 = vmatprep.subr.bf16.mxu1 %v1597_v0 }
  0x6f   :  { %1314 = vmatpush3.bf16.msra.mxu0 %v1657_v4 }
  0x70   :  { %1315 = vmatprep.subr.bf16.mxu0 %v1597_v0 }
  0x71   :  { %1334 = vmatpush3.bf16.msra.mxu1 %v1657_v4 }
  0x72   :  { %1335 = vmatprep.subr.bf16.mxu1 %v1597_v0 }
  0x73   :  { %1316 = vmatpush3.bf16.msra.mxu0 %v1666_v5 }
  0x74   :  { %1317 = vmatprep.subr.bf16.mxu0 %v1597_v0 }
  0x75   :  { %1336 = vmatpush3.bf16.msra.mxu1 %v1666_v5 }
  0x76   :  { %1337 = vmatprep.subr.bf16.mxu1 %v1597_v0 }
  0x77   :  { %1318 = vmatpush3.bf16.msra.mxu0 %v1674_v6 }
  0x78   :  { %1319 = vmatprep.subr.bf16.mxu0 %v1597_v0 }
  0x79   :  { %1338 = vmatpush3.bf16.msra.mxu1 %v1674_v6 }
  0x7a   :  { %1339 = vmatprep.subr.bf16.mxu1 %v1597_v0 }
  0x7b   :  { %1320 = vmatpush3.bf16.msra.mxu0 %v1684_v7 }
  0x7c   :  { %1321 = vmatprep.subr.bf16.mxu0 %v1597_v0 }
  0x7d   :  { %1340 = vmatpush3.bf16.msra.mxu1 %v1684_v7 }
  0x7e   :  { %1341 = vmatprep.subr.bf16.mxu1 %v1597_v0 }
  0x7f   :  { %1322 = vmatpush3.bf16.msra.mxu0 %v1693_v8 }
  0x80   :  { %1347 = vmatprep.subr.bf16.mxu0 %v1597_v0 }
  0x81   :  { %1342 = vmatpush3.bf16.msra.mxu1 %v1693_v8 }
  0x82   :  { %1324 = vmatmul.mubr.bf16.vlgmr.msra.gmra.mrb[12].mxu0 %v1552_v15  ;;  %1367 = vmatprep.subr.bf16.mxu1 %v1597_v0 }
  0x83   :  { %1348 = vmatpush3.bf16.msra.mxu0 %v1831_v16  ;;  %1363 = vmatprep.mubr.msk.bf16.mxu0 %vm1598_vm0, %v1597_v0 }
  0x84   :  { %1349 = vmatprep.subr.bf16.mxu0 %v1597_v0  ;;  %1344 = vmatmul.mubr.bf16.vlgmr.msra.gmra.mrb[12].mxu1 %v1564_v17 }
  0x85   :  { %1368 = vmatpush3.bf16.msra.mxu1 %v1831_v16  ;;  %1383 = vmatprep.mubr.msk.bf16.mxu1 %vm1598_vm0, %v1597_v0 }
  0x86   :  { %1369 = vmatprep.subr.bf16.mxu1 %v1597_v0 }
  0x87   :  { %1350 = vmatpush3.bf16.msra.mxu0 %v1843_v18 }
  0x88   :  { %1351 = vmatprep.subr.bf16.mxu0 %v1597_v0 }
  0x89   :  { %1370 = vmatpush3.bf16.msra.mxu1 %v1843_v18 }
  0x8a   :  { %1371 = vmatprep.subr.bf16.mxu1 %v1597_v0 }
  0x8b   :  { %1352 = vmatpush3.bf16.msra.mxu0 %v1856_v19 }
  0x8c   :  { %1353 = vmatprep.subr.bf16.mxu0 %v1597_v0 }
  0x8d   :  { %1372 = vmatpush3.bf16.msra.mxu1 %v1856_v19 }
  0x8e   :  { %1373 = vmatprep.subr.bf16.mxu1 %v1597_v0 }
  0x8f   :  { %1354 = vmatpush3.bf16.msra.mxu0 %v1865_v20 }
  0x90   :  { %1355 = vmatprep.subr.bf16.mxu0 %v1597_v0 }
  0x91   :  { %1374 = vmatpush3.bf16.msra.mxu1 %v1865_v20 }
  0x92   :  { %1375 = vmatprep.subr.bf16.mxu1 %v1597_v0 }
  0x93   :  { %1356 = vmatpush3.bf16.msra.mxu0 %v1874_v21 }
  0x94   :  { %1357 = vmatprep.subr.bf16.mxu0 %v1597_v0 }
  0x95   :  { %1376 = vmatpush3.bf16.msra.mxu1 %v1874_v21 }
  0x96   :  { %1377 = vmatprep.subr.bf16.mxu1 %v1597_v0 }
  0x97   :  { %1358 = vmatpush3.bf16.msra.mxu0 %v1883_v22 }
  0x98   :  { %1359 = vmatprep.subr.bf16.mxu0 %v1597_v0 }
  0x99   :  { %1378 = vmatpush3.bf16.msra.mxu1 %v1883_v22 }
  0x9a   :  { %1379 = vmatprep.subr.bf16.mxu1 %v1597_v0 }
  0x9b   :  { %1360 = vmatpush3.bf16.msra.mxu0 %v1892_v23 }
  0x9c   :  { %1361 = vmatprep.subr.bf16.mxu0 %v1597_v0 }
  0x9d   :  { %1380 = vmatpush3.bf16.msra.mxu1 %v1892_v23 }
  0x9e   :  { %1381 = vmatprep.subr.bf16.mxu1 %v1597_v0 }
  0x9f   :  { %1362 = vmatpush3.bf16.msra.mxu0 %v1901_v24 }
  0xa0   :  { %1387 = vmatprep.subr.bf16.mxu0 %v1597_v0 }
  0xa1   :  { %1382 = vmatpush3.bf16.msra.mxu1 %v1901_v24 }
  0xa2   :  { %1364 = vmatmul.mubr.bf16.vlgmr.msra.gmra.mrb[0].mxu0 %v532_v27  ;;  %1407 = vmatprep.subr.bf16.mxu1 %v1597_v0 }
  0xa3   :  { %1388 = vmatpush3.bf16.msra.mxu0 %v1831_v16  ;;  %1403 = vmatprep.mubr.msk.bf16.mxu0 %vm1598_vm0, %v1597_v0 }
  0xa4   :  { %1389 = vmatprep.subr.bf16.mxu0 %v1597_v0 }
  0xa7   :  { %1390 = vmatpush3.bf16.msra.mxu0 %v1843_v18 }
  0xa8   :  { %1391 = vmatprep.subr.bf16.mxu0 %v1597_v0 }
  0xab   :  { %1392 = vmatpush3.bf16.msra.mxu0 %v1856_v19 }
  0xac   :  { %1393 = vmatprep.subr.bf16.mxu0 %v1597_v0 }
  0xaf   :  { %1394 = vmatpush3.bf16.msra.mxu0 %v1865_v20 }
  0xb0   :  { %1395 = vmatprep.subr.bf16.mxu0 %v1597_v0 }
  0xb3   :  { %1396 = vmatpush3.bf16.msra.mxu0 %v1874_v21 }
  0xb4   :  { %1397 = vmatprep.subr.bf16.mxu0 %v1597_v0 }
  0xb7   :  { %1398 = vmatpush3.bf16.msra.mxu0 %v1883_v22 }
  0xb8   :  { %1399 = vmatprep.subr.bf16.mxu0 %v1597_v0 }
  0xbb   :  { %1400 = vmatpush3.bf16.msra.mxu0 %v1892_v23 }
  0xbc   :  { %1401 = vmatprep.subr.bf16.mxu0 %v1597_v0 }
  0xbf   :  { %1402 = vmatpush3.bf16.msra.mxu0 %v1901_v24 }
  0xc0   :  { %1427 = vmatprep.subr.bf16.mxu0 %v1597_v0 }
 0x175   :  { %v615_v28 = vpop.f32.mrb[0].mxu0 }
 0x176   :  { %1565 = vtanh.f32 %v615_v28  ;;  %v1365_v29 = vpop.f32.mrb[1].mxu0 }
 0x177   :  { %v618_v30 = vpop.f32.mrb[2].mxu0 }
 0x178   :  { %1567 = vtanh.f32 %v618_v30  ;;  %v1366_v31 = vpop.f32.mrb[3].mxu0 }
 0x180   :  { %v1566_v32 = vpop.eup %1565 }
 0x181   :  { %626 = vst [vmem:[%s2074_s4] sm:$0xff] %v1566_v32 }
 0x182   :  { %v1568_v33 = vpop.eup %1567 }
 0x183   :  { %627 = vst [vmem:[%s2074_s4 + $0x8] sm:$0xff] %v1568_v33  ;;  %v630_v34 = vpack.c.bf16 %v1568_v33, %v1566_v32 }
 0x185   :  { %1384 = vmatmul.mubr.bf16.vlgmr.msra.gmra.mrb[0].mxu1 %v630_v34 }
 0x186   :  { %1408 = vmatpush3.bf16.msra.mxu1 %v1831_v16  ;;  %1423 = vmatprep.mubr.msk.bf16.mxu1 %vm1598_vm0, %v1597_v0 }
 0x187   :  { %1409 = vmatprep.subr.bf16.mxu1 %v1597_v0 }
 0x18a   :  { %1410 = vmatpush3.bf16.msra.mxu1 %v1843_v18 }
 0x18b   :  { %1411 = vmatprep.subr.bf16.mxu1 %v1597_v0 }
 0x18e   :  { %1412 = vmatpush3.bf16.msra.mxu1 %v1856_v19 }
 0x18f   :  { %1413 = vmatprep.subr.bf16.mxu1 %v1597_v0 }
 0x192   :  { %1414 = vmatpush3.bf16.msra.mxu1 %v1865_v20 }
 0x193   :  { %1415 = vmatprep.subr.bf16.mxu1 %v1597_v0 }
 0x196   :  { %1416 = vmatpush3.bf16.msra.mxu1 %v1874_v21 }
 0x197   :  { %1417 = vmatprep.subr.bf16.mxu1 %v1597_v0 }
 0x19a   :  { %1418 = vmatpush3.bf16.msra.mxu1 %v1883_v22 }
 0x19b   :  { %1419 = vmatprep.subr.bf16.mxu1 %v1597_v0 }
 0x19e   :  { %1420 = vmatpush3.bf16.msra.mxu1 %v1892_v23 }
 0x19f   :  { %1421 = vmatprep.subr.bf16.mxu1 %v1597_v0 }
 0x1a2   :  { %1422 = vmatpush3.bf16.msra.mxu1 %v1901_v24 }
 0x1a3   :  { %1447 = vmatprep.subr.bf16.mxu1 %v1597_v0 }
 0x258   :  { %v665_v35 = vpop.f32.mrb[0].mxu1 }
 0x259   :  { %1569 = vtanh.f32 %v665_v35  ;;  %v1385_v36 = vpop.f32.mrb[1].mxu1 }
 0x25a   :  { %v668_v37 = vpop.f32.mrb[2].mxu1 }
 0x25b   :  { %1571 = vtanh.f32 %v668_v37  ;;  %v1386_v38 = vpop.f32.mrb[3].mxu1 }
 0x263   :  { %v1570_v39 = vpop.eup %1569 }
 0x264   :  { %1029 = vst [vmem:[%s2074_s4 + $0x10] sm:$0xff] %v1570_v39 }
 0x265   :  { %v1572_v40 = vpop.eup %1571 }
 0x266   :  { %1030 = vst [vmem:[%s2074_s4 + $0x18] sm:$0xff] %v1572_v40  ;;  %v681_v41 = vpack.c.bf16 %v1572_v40, %v1570_v39 }
 0x268   :  { %1404 = vmatmul.mubr.bf16.vlgmr.msra.gmra.mrb[4].mxu0 %v681_v41 }
 0x269   :  { %1428 = vmatpush3.bf16.msra.mxu0 %v1831_v16  ;;  %1443 = vmatprep.mubr.msk.bf16.mxu0 %vm1598_vm0, %v1597_v0 }
 0x26a   :  { %1429 = vmatprep.subr.bf16.mxu0 %v1597_v0 }
 0x26d   :  { %1430 = vmatpush3.bf16.msra.mxu0 %v1843_v18 }
 0x26e   :  { %1431 = vmatprep.subr.bf16.mxu0 %v1597_v0 }
 0x271   :  { %1432 = vmatpush3.bf16.msra.mxu0 %v1856_v19 }
 0x272   :  { %1433 = vmatprep.subr.bf16.mxu0 %v1597_v0 }
 0x275   :  { %1434 = vmatpush3.bf16.msra.mxu0 %v1865_v20 }
 0x276   :  { %1435 = vmatprep.subr.bf16.mxu0 %v1597_v0 }
 0x279   :  { %1436 = vmatpush3.bf16.msra.mxu0 %v1874_v21 }
 0x27a   :  { %1437 = vmatprep.subr.bf16.mxu0 %v1597_v0 }
 0x27d   :  { %1438 = vmatpush3.bf16.msra.mxu0 %v1883_v22 }
 0x27e   :  { %1439 = vmatprep.subr.bf16.mxu0 %v1597_v0 }
 0x281   :  { %1440 = vmatpush3.bf16.msra.mxu0 %v1892_v23 }
 0x282   :  { %1441 = vmatprep.subr.bf16.mxu0 %v1597_v0 }
 0x285   :  { %1442 = vmatpush3.bf16.msra.mxu0 %v1901_v24 }
 0x286   :  { %1467 = vmatprep.subr.bf16.mxu0 %v1597_v0 }
 0x33b   :  { %v716_v42 = vpop.f32.mrb[4].mxu0 }
 0x33c   :  { %1573 = vtanh.f32 %v716_v42  ;;  %v1405_v43 = vpop.f32.mrb[5].mxu0 }
 0x33d   :  { %v719_v44 = vpop.f32.mrb[6].mxu0 }
 0x33e   :  { %1575 = vtanh.f32 %v719_v44  ;;  %v1406_v45 = vpop.f32.mrb[7].mxu0 }
 0x346   :  { %v1574_v46 = vpop.eup %1573 }
 0x347   :  { %1031 = vst [vmem:[%s2074_s4 + $0x20] sm:$0xff] %v1574_v46 }
 0x348   :  { %v1576_v47 = vpop.eup %1575 }
 0x349   :  { %1032 = vst [vmem:[%s2074_s4 + $0x28] sm:$0xff] %v1576_v47  ;;  %v732_v48 = vpack.c.bf16 %v1576_v47, %v1574_v46 }
 0x34b   :  { %1424 = vmatmul.mubr.bf16.vlgmr.msra.gmra.mrb[4].mxu1 %v732_v48 }
 0x34c   :  { %1448 = vmatpush3.bf16.msra.mxu1 %v1831_v16  ;;  %1463 = vmatprep.mubr.msk.bf16.mxu1 %vm1598_vm0, %v1597_v0 }
 0x34d   :  { %1449 = vmatprep.subr.bf16.mxu1 %v1597_v0 }
 0x350   :  { %1450 = vmatpush3.bf16.msra.mxu1 %v1843_v18 }
 0x351   :  { %1451 = vmatprep.subr.bf16.mxu1 %v1597_v0 }
 0x354   :  { %1452 = vmatpush3.bf16.msra.mxu1 %v1856_v19 }
 0x355   :  { %1453 = vmatprep.subr.bf16.mxu1 %v1597_v0 }
 0x358   :  { %1454 = vmatpush3.bf16.msra.mxu1 %v1865_v20 }
 0x359   :  { %1455 = vmatprep.subr.bf16.mxu1 %v1597_v0 }
 0x35c   :  { %1456 = vmatpush3.bf16.msra.mxu1 %v1874_v21 }
 0x35d   :  { %1457 = vmatprep.subr.bf16.mxu1 %v1597_v0 }
 0x360   :  { %1458 = vmatpush3.bf16.msra.mxu1 %v1883_v22 }
 0x361   :  { %1459 = vmatprep.subr.bf16.mxu1 %v1597_v0 }
 0x364   :  { %1460 = vmatpush3.bf16.msra.mxu1 %v1892_v23 }
 0x365   :  { %1461 = vmatprep.subr.bf16.mxu1 %v1597_v0 }
 0x368   :  { %1462 = vmatpush3.bf16.msra.mxu1 %v1901_v24 }
 0x369   :  { %1487 = vmatprep.subr.bf16.mxu1 %v1597_v0 }
 0x41e   :  { %v767_v49 = vpop.f32.mrb[4].mxu1 }
 0x41f   :  { %1577 = vtanh.f32 %v767_v49  ;;  %v1425_v50 = vpop.f32.mrb[5].mxu1 }
 0x420   :  { %v770_v51 = vpop.f32.mrb[6].mxu1 }
 0x421   :  { %1579 = vtanh.f32 %v770_v51  ;;  %v1426_v52 = vpop.f32.mrb[7].mxu1 }
 0x429   :  { %v1578_v53 = vpop.eup %1577 }
 0x42a   :  { %1033 = vst [vmem:[%s2074_s4 + $0x30] sm:$0xff] %v1578_v53 }
 0x42b   :  { %v1580_v54 = vpop.eup %1579 }
 0x42c   :  { %1034 = vst [vmem:[%s2074_s4 + $0x38] sm:$0xff] %v1580_v54  ;;  %v783_v55 = vpack.c.bf16 %v1580_v54, %v1578_v53 }
 0x42e   :  { %1444 = vmatmul.mubr.bf16.vlgmr.msra.gmra.mrb[8].mxu0 %v783_v55 }
 0x42f   :  { %1468 = vmatpush3.bf16.msra.mxu0 %v1831_v16  ;;  %1483 = vmatprep.mubr.msk.bf16.mxu0 %vm1598_vm0, %v1597_v0 }
 0x430   :  { %1469 = vmatprep.subr.bf16.mxu0 %v1597_v0 }
 0x433   :  { %1470 = vmatpush3.bf16.msra.mxu0 %v1843_v18 }
 0x434   :  { %1471 = vmatprep.subr.bf16.mxu0 %v1597_v0 }
 0x437   :  { %1472 = vmatpush3.bf16.msra.mxu0 %v1856_v19 }
 0x438   :  { %1473 = vmatprep.subr.bf16.mxu0 %v1597_v0 }
 0x43b   :  { %1474 = vmatpush3.bf16.msra.mxu0 %v1865_v20 }
 0x43c   :  { %1475 = vmatprep.subr.bf16.mxu0 %v1597_v0 }
 0x43f   :  { %1476 = vmatpush3.bf16.msra.mxu0 %v1874_v21 }
 0x440   :  { %1477 = vmatprep.subr.bf16.mxu0 %v1597_v0 }
 0x443   :  { %1478 = vmatpush3.bf16.msra.mxu0 %v1883_v22 }
 0x444   :  { %1479 = vmatprep.subr.bf16.mxu0 %v1597_v0 }
 0x447   :  { %1480 = vmatpush3.bf16.msra.mxu0 %v1892_v23 }
 0x448   :  { %1481 = vmatprep.subr.bf16.mxu0 %v1597_v0 }
 0x44b   :  { %1482 = vmatpush3.bf16.msra.mxu0 %v1901_v24 }
 0x501   :  { %v818_v56 = vpop.f32.mrb[8].mxu0 }
 0x502   :  { %1581 = vtanh.f32 %v818_v56  ;;  %v1445_v57 = vpop.f32.mrb[9].mxu0 }
 0x503   :  { %v821_v58 = vpop.f32.mrb[10].mxu0 }
 0x504   :  { %1583 = vtanh.f32 %v821_v58  ;;  %v1446_v59 = vpop.f32.mrb[11].mxu0 }
 0x50c   :  { %v1582_v60 = vpop.eup %1581 }
 0x50d   :  { %1035 = vst [vmem:[%s2074_s4 + $0x40] sm:$0xff] %v1582_v60 }
 0x50e   :  { %v1584_v61 = vpop.eup %1583 }
 0x50f   :  { %1036 = vst [vmem:[%s2074_s4 + $0x48] sm:$0xff] %v1584_v61  ;;  %v834_v62 = vpack.c.bf16 %v1584_v61, %v1582_v60 }
 0x511   :  { %1464 = vmatmul.mubr.bf16.vlgmr.msra.gmra.mrb[8].mxu1 %v834_v62 }
 0x512   :  { %1488 = vmatpush3.bf16.msra.mxu1 %v1831_v16  ;;  %1503 = vmatprep.mubr.msk.bf16.mxu1 %vm1598_vm0, %v1597_v0 }
 0x513   :  { %1489 = vmatprep.subr.bf16.mxu1 %v1597_v0 }
 0x516   :  { %1490 = vmatpush3.bf16.msra.mxu1 %v1843_v18 }
 0x517   :  { %1491 = vmatprep.subr.bf16.mxu1 %v1597_v0 }
 0x51a   :  { %1492 = vmatpush3.bf16.msra.mxu1 %v1856_v19 }
 0x51b   :  { %1493 = vmatprep.subr.bf16.mxu1 %v1597_v0 }
 0x51e   :  { %1494 = vmatpush3.bf16.msra.mxu1 %v1865_v20 }
 0x51f   :  { %1495 = vmatprep.subr.bf16.mxu1 %v1597_v0 }
 0x522   :  { %1496 = vmatpush3.bf16.msra.mxu1 %v1874_v21 }
 0x523   :  { %1497 = vmatprep.subr.bf16.mxu1 %v1597_v0 }
 0x526   :  { %1498 = vmatpush3.bf16.msra.mxu1 %v1883_v22 }
 0x527   :  { %1499 = vmatprep.subr.bf16.mxu1 %v1597_v0 }
 0x52a   :  { %1500 = vmatpush3.bf16.msra.mxu1 %v1892_v23 }
 0x52b   :  { %1501 = vmatprep.subr.bf16.mxu1 %v1597_v0 }
 0x52e   :  { %1502 = vmatpush3.bf16.msra.mxu1 %v1901_v24 }
 0x5e4   :  { %v869_v63 = vpop.f32.mrb[8].mxu1 }
 0x5e5   :  { %1585 = vtanh.f32 %v869_v63  ;;  %v1465_v1 = vpop.f32.mrb[9].mxu1 }
 0x5e6   :  { %v872_v2 = vpop.f32.mrb[10].mxu1 }
 0x5e7   :  { %1587 = vtanh.f32 %v872_v2  ;;  %v1466_v3 = vpop.f32.mrb[11].mxu1 }
 0x5ef   :  { %v1586_v4 = vpop.eup %1585 }
 0x5f0   :  { %1037 = vst [vmem:[%s2074_s4 + $0x50] sm:$0xff] %v1586_v4 }
 0x5f1   :  { %v1588_v5 = vpop.eup %1587 }
 0x5f2   :  { %1038 = vst [vmem:[%s2074_s4 + $0x58] sm:$0xff] %v1588_v5  ;;  %v885_v6 = vpack.c.bf16 %v1588_v5, %v1586_v4 }
 0x5f4   :  { %1484 = vmatmul.mubr.bf16.vlgmr.msra.gmra.mrb[12].mxu0 %v885_v6 }
 0x6c7   :  { %v920_v0 = vpop.f32.mrb[12].mxu0 }
 0x6c8   :  { %1589 = vtanh.f32 %v920_v0  ;;  %v1485_v7 = vpop.f32.mrb[13].mxu0 }
 0x6c9   :  { %v923_v8 = vpop.f32.mrb[14].mxu0 }
 0x6ca   :  { %1591 = vtanh.f32 %v923_v8  ;;  %v1486_v9 = vpop.f32.mrb[15].mxu0 }
 0x6d2   :  { %v1590_v10 = vpop.eup %1589 }
 0x6d3   :  { %1039 = vst [vmem:[%s2074_s4 + $0x60] sm:$0xff] %v1590_v10 }
 0x6d4   :  { %v1592_v11 = vpop.eup %1591 }
 0x6d5   :  { %1040 = vst [vmem:[%s2074_s4 + $0x68] sm:$0xff] %v1592_v11  ;;  %v936_v12 = vpack.c.bf16 %v1592_v11, %v1590_v10 }
 0x6d7   :  { %1504 = vmatmul.mubr.bf16.vlgmr.msra.gmra.mrb[12].mxu1 %v936_v12 }
 0x7aa   :  { %v971_v13 = vpop.f32.mrb[12].mxu1 }
 0x7ab   :  { %1593 = vtanh.f32 %v971_v13  ;;  %v1505_v14 = vpop.f32.mrb[13].mxu1 }
 0x7ac   :  { %v974_v15 = vpop.f32.mrb[14].mxu1 }
 0x7ad   :  { %1595 = vtanh.f32 %v974_v15  ;;  %v1506_v16 = vpop.f32.mrb[15].mxu1 }
 0x7b5   :  { %v1594_v17 = vpop.eup %1593 }
 0x7b6   :  { %1041 = vst [vmem:[%s2074_s4 + $0x70] sm:$0xff] %v1594_v17 }
 0x7b7   :  { %v1596_v18 = vpop.eup %1595 }
 0x7b8   :  { %1042 = vst [vmem:[%s2074_s4 + $0x78] sm:$0xff] %v1596_v18 }

</bundles_post_ra>
